<compile_context>
chip_gen: v5e
topology: v5e:2x2
jax: 0.10.0
libtpu: 0.0.40
codegen_flags: <defaults>
</compile_context>

<pallas_src>
import functools

import jax
import jax.numpy as jnp
from jax.experimental import pallas as pl
from jax.experimental.pallas import tpu as pltpu

_BN_EPS = 1e-5


def _band_weight(w_hwio, width):
    """Fold the 3 horizontal taps (and the W-direction zero padding) of a 3x3 conv
    into one stacked banded matrix:

        band[ky*W*Cin + wi*Cin + ci, w*Cout + co] = w[ky, kx, ci, co],  wi = w + kx - 1

    Taps with wi outside [0, W) are dropped (implicit zero padding in W).
    Returned shape: (3 * W * Cin, W * Cout) -- the ky blocks are stacked along K so
    the whole conv row becomes a single matmul against the 3 row-shifted slabs.
    """
    kh, kw, cin, cout = w_hwio.shape
    band = jnp.zeros((kh, width * cin, width * cout), w_hwio.dtype)
    for kx in range(kw):
        for w in range(width):
            wi = w + kx - 1
            if 0 <= wi < width:
                band = band.at[:, wi * cin:(wi + 1) * cin,
                               w * cout:(w + 1) * cout].set(w_hwio[:, kx])
    return band.reshape(kh * width * cin, width * cout)


def basic_block_kernel(x_ref, wb1_ref, g1_ref, b1_ref,
                       wb2_ref, g2_ref, b2_ref, pool_ref,
                       out_ref, *, height, width):
    """All-in-one BasicBlock forward on a lane-dense (N*H, W*C) slab.

    x_ref    : (N*H, W*Cin)        f32   lane-dense input (conv1 LHS + residual)
    wb1_ref  : (3*W*Cin, W*Cout)   bf16  conv1 stacked band weights (W-pad folded in)
    g1/b1    : (1, W*Cout)         f32   bn1 gamma/beta, tiled over W
    wb2_ref  : (3*W*Cout, W*Cout)  bf16  conv2 stacked band weights
    g2/b2    : (1, W*Cout)         f32   bn2 gamma/beta, tiled over W
    pool_ref : (W*Cout, W*Cout)    f32   0/1 per-channel pooling matrix
    out_ref  : (N*H, W*Cout)       f32   lane-dense output
    """
    NH, WC = out_ref.shape
    H = height
    inv_nhw = 1.0 / float(NH * width)
    pool = pool_ref[...]

    # Per-image boundary-row masks (replace the explicit H-halo zero padding).
    row = jax.lax.broadcasted_iota(jnp.int32, (NH, WC), 0)
    h_idx = row % H
    not_top = h_idx != 0            # row h-1 exists inside the same image
    not_bot = h_idx != (H - 1)      # row h+1 exists inside the same image

    def conv3x3_band(src_f32, wb_ref):
        # Three kernel-row shifts via sublane roll + boundary mask; the roll wraps
        # exactly onto the rows that the mask zeroes (image top/bottom padding and
        # cross-image contamination handled together).  K = 3*W*C single matmul.
        up = jnp.where(not_top, pltpu.roll(src_f32, 1, 0), 0.0)        # x[r-1]
        down = jnp.where(not_bot, pltpu.roll(src_f32, NH - 1, 0), 0.0)  # x[r+1]
        lhs = jnp.concatenate([up, src_f32, down], axis=1).astype(jnp.bfloat16)
        return jnp.dot(lhs, wb_ref[...], preferred_element_type=jnp.float32)

    def batchnorm(acc, gamma_l, beta_l):
        # Training-mode BN, one pass: per-lane sum / sum-of-squares (sublane
        # reduce), then a single (2, WC) x (WC, WC) pooling matmul to get the
        # per-channel mean / E[x^2] broadcast back across the W lane groups.
        s = jnp.sum(acc, axis=0, keepdims=True)           # (1, WC)
        s2 = jnp.sum(acc * acc, axis=0, keepdims=True)    # (1, WC)
        stats = jnp.concatenate([s, s2], axis=0)          # (2, WC)
        pooled = jnp.dot(stats, pool, preferred_element_type=jnp.float32) * inv_nhw
        mean = pooled[0:1, :]
        var = pooled[1:2, :] - mean * mean                # biased variance
        scale = gamma_l * jax.lax.rsqrt(var + _BN_EPS)
        shift = beta_l - mean * scale
        return acc * scale + shift

    x = x_ref[...]                                        # f32, used twice (LHS + residual)

    # ---- conv1 (one banded matmul) + bn1 + relu ----
    acc1 = conv3x3_band(x, wb1_ref)
    h1 = jnp.maximum(batchnorm(acc1, g1_ref[...], b1_ref[...]), 0.0)

    # ---- conv2 (one banded matmul) + bn2 + identity shortcut + relu ----
    acc2 = conv3x3_band(h1, wb2_ref)
    o = batchnorm(acc2, g2_ref[...], b2_ref[...]) + x
    out_ref[...] = jnp.maximum(o, 0.0)                    # lane-dense f32 store


@jax.jit
def basic_block_forward(x_nchw, params):
    """Wrapper. x_nchw: (N, C, H, W) like the PyTorch module input."""
    w1, g1, b1, w2, g2, b2 = params
    x = jnp.transpose(x_nchw, (0, 2, 3, 1)).astype(jnp.float32)   # -> NHWC
    N, H, W, Cin = x.shape
    Cout = w1.shape[-1]
    assert Cin == Cout, "identity shortcut (downsample=None) needs Cin == Cout"
    WC = W * Cout

    # Single lane-dense f32 activation slab (shipped to VMEM once).
    xl = x.reshape(N * H, W * Cin)

    # Stacked band weights (W zero-padding folded in), bf16 MXU operands.
    wb1 = _band_weight(w1, W).astype(jnp.bfloat16)        # (3*W*Cin,  W*Cout)
    wb2 = _band_weight(w2, W).astype(jnp.bfloat16)        # (3*W*Cout, W*Cout)

    # BN affine params tiled to the lane-dense layout.
    g1l = jnp.tile(g1, W).reshape(1, WC).astype(jnp.float32)
    b1l = jnp.tile(b1, W).reshape(1, WC).astype(jnp.float32)
    g2l = jnp.tile(g2, W).reshape(1, WC).astype(jnp.float32)
    b2l = jnp.tile(b2, W).reshape(1, WC).astype(jnp.float32)

    # 0/1 per-channel pooling matrix (pool + broadcast-back across the W groups).
    lane = jnp.arange(WC)
    pool = (lane[:, None] % Cout == lane[None, :] % Cout).astype(jnp.float32)

    kernel = functools.partial(basic_block_kernel, height=H, width=W)

    out = pl.pallas_call(
        kernel,
        out_shape=jax.ShapeDtypeStruct((N * H, WC), jnp.float32),
        in_specs=[pl.BlockSpec(memory_space=pltpu.MemorySpace.VMEM)] * 8,
        out_specs=pl.BlockSpec(memory_space=pltpu.MemorySpace.VMEM),
        compiler_params=pltpu.CompilerParams(vmem_limit_bytes=32 * 1024 * 1024),
    )(xl, wb1, g1l, b1l, wb2, g2l, b2l, pool)

    return jnp.transpose(out.reshape(N, H, W, Cout), (0, 3, 1, 2))          # -> NCHW


def ref_forward(x_nchw, params):
    """Pure-JAX f32 reference (same math as the PyTorch module, training-mode BN)."""
    w1, g1, b1, w2, g2, b2 = params
    x = jnp.transpose(x_nchw, (0, 2, 3, 1)).astype(jnp.float32)

    def conv(y, w):
        return jax.lax.conv_general_dilated(
            y, w, window_strides=(1, 1), padding="SAME",
            dimension_numbers=("NHWC", "HWIO", "NHWC"))

    def bn(y, g, b):
        m = jnp.mean(y, axis=(0, 1, 2), keepdims=True)
        v = jnp.mean((y - m) ** 2, axis=(0, 1, 2), keepdims=True)
        return (y - m) * jax.lax.rsqrt(v + _BN_EPS) * g + b

    h = jnp.maximum(bn(conv(x, w1), g1, b1), 0.0)
    o = jnp.maximum(bn(conv(h, w2), g2, b2) + x, 0.0)
    return jnp.transpose(o, (0, 3, 1, 2))


if __name__ == "__main__":
    # Small, module-consistent shapes: N=2, inplanes=planes=8, 16x16 spatial,
    # stride=1, downsample=None.  W * C = 128 -> fully lane-dense kernel layout.
    N, C, H, W = 2, 8, 16, 16
    planes = C

    key = jax.random.PRNGKey(0)
    kx, k1, k2, kg1, kb1, kg2, kb2 = jax.random.split(key, 7)

    x = jax.random.normal(kx, (N, C, H, W), jnp.float32)

    # Deterministic synthetic parameters (HWIO conv weights, BN affine params).
    w1 = jax.random.normal(k1, (3, 3, C, planes), jnp.float32) * 0.1
    w2 = jax.random.normal(k2, (3, 3, planes, planes), jnp.float32) * 0.1
    g1 = 1.0 + 0.1 * jax.random.normal(kg1, (planes,), jnp.float32)
    b1 = 0.1 * jax.random.normal(kb1, (planes,), jnp.float32)
    g2 = 1.0 + 0.1 * jax.random.normal(kg2, (planes,), jnp.float32)
    b2 = 0.1 * jax.random.normal(kb2, (planes,), jnp.float32)
    params = (w1, g1, b1, w2, g2, b2)

    out = jax.block_until_ready(basic_block_forward(x, params))
    ref = jax.block_until_ready(ref_forward(x, params))

    assert out.shape == (N, planes, H, W), out.shape
    max_err = float(jnp.max(jnp.abs(out - ref)))
    # bf16 MXU operands (f32 accumulation) -> bf16-aware tolerance vs f32 reference.
    assert jnp.allclose(out, ref, atol=5e-2, rtol=5e-2), max_err
    print("KERNEL_OK")
</pallas_src>

<mosaic_0001>
module attributes {stable_mosaic.version = 11 : i64} {
  func.func @basic_block_kernel(%arg0: memref<32x128xf32, #tpu.memory_space<vmem>>, %arg1: memref<384x128xbf16, #tpu.memory_space<vmem>>, %arg2: memref<1x128xf32, #tpu.memory_space<vmem>>, %arg3: memref<1x128xf32, #tpu.memory_space<vmem>>, %arg4: memref<384x128xbf16, #tpu.memory_space<vmem>>, %arg5: memref<1x128xf32, #tpu.memory_space<vmem>>, %arg6: memref<1x128xf32, #tpu.memory_space<vmem>>, %arg7: memref<128x128xf32, #tpu.memory_space<vmem>>, %arg8: memref<32x128xf32, #tpu.memory_space<vmem>>) attributes {dimension_semantics = [], scalar_prefetch = 0 : i64, scratch_operands = 0 : i64, tpu.core_type = #tpu.core_type<tc>} {
    %c0 = arith.constant 0 : index
    %c0_0 = arith.constant 0 : index
    %0 = vector.load %arg7[%c0, %c0_0] : memref<128x128xf32, #tpu.memory_space<vmem>>, vector<128x128xf32>
    %1 = tpu.iota {dimensions = array<i32: 0>} : vector<32x128xi32>
    %c16_i32 = arith.constant 16 : i32
    %c0_i32 = arith.constant 0 : i32
    %2 = arith.cmpi eq, %c16_i32, %c0_i32 : i32
    %c1_i32 = arith.constant 1 : i32
    %3 = arith.select %2, %c1_i32, %c16_i32 : i32
    %4 = vector.broadcast %3 : i32 to vector<32x128xi32>
    %5 = arith.remsi %1, %4 : vector<32x128xi32>
    %c0_i32_1 = arith.constant 0 : i32
    %6 = vector.broadcast %c0_i32_1 : i32 to vector<32x128xi32>
    %7 = arith.cmpi ne, %5, %6 : vector<32x128xi32>
    %c0_i32_2 = arith.constant 0 : i32
    %8 = vector.broadcast %c0_i32_2 : i32 to vector<32x128xi32>
    %9 = arith.cmpi slt, %5, %8 : vector<32x128xi32>
    %c0_i32_3 = arith.constant 0 : i32
    %10 = arith.cmpi slt, %3, %c0_i32_3 : i32
    %11 = vector.broadcast %10 : i1 to vector<32x128xi1>
    %12 = vector.broadcast %11 : vector<32x128xi1> to vector<32x128xi1>
    %13 = arith.xori %9, %12 : vector<32x128xi1>
    %14 = arith.andi %13, %7 : vector<32x128xi1>
    %15 = vector.broadcast %3 : i32 to vector<32x128xi32>
    %16 = arith.addi %5, %15 : vector<32x128xi32>
    %17 = arith.select %14, %16, %5 : vector<32x128xi1>, vector<32x128xi32>
    %c0_i32_4 = arith.constant 0 : i32
    %18 = vector.broadcast %c0_i32_4 : i32 to vector<32x128xi32>
    %19 = arith.cmpi ne, %17, %18 : vector<32x128xi32>
    %c15_i32 = arith.constant 15 : i32
    %20 = vector.broadcast %c15_i32 : i32 to vector<32x128xi32>
    %21 = arith.cmpi ne, %17, %20 : vector<32x128xi32>
    %c0_5 = arith.constant 0 : index
    %c0_6 = arith.constant 0 : index
    %22 = vector.load %arg0[%c0_5, %c0_6] : memref<32x128xf32, #tpu.memory_space<vmem>>, vector<32x128xf32>
    %c1_i32_7 = arith.constant 1 : i32
    %23 = tpu.dynamic_rotate %22 by %c1_i32_7 dim 0 : vector<32x128xf32>, i32 -> vector<32x128xf32>
    %cst = arith.constant 0.000000e+00 : f32
    %24 = vector.broadcast %cst : f32 to vector<32x128xf32>
    %25 = arith.select %19, %23, %24 : vector<32x128xi1>, vector<32x128xf32>
    %c31_i32 = arith.constant 31 : i32
    %26 = tpu.dynamic_rotate %22 by %c31_i32 dim 0 : vector<32x128xf32>, i32 -> vector<32x128xf32>
    %cst_8 = arith.constant 0.000000e+00 : f32
    %27 = vector.broadcast %cst_8 : f32 to vector<32x128xf32>
    %28 = arith.select %21, %26, %27 : vector<32x128xi1>, vector<32x128xf32>
    %29 = tpu.concatenate %25, %22, %28 in 1 : vector<32x128xf32>, vector<32x128xf32>, vector<32x128xf32> -> vector<32x384xf32>
    %30 = arith.truncf %29 : vector<32x384xf32> to vector<32x384xbf16>
    %c0_9 = arith.constant 0 : index
    %c0_10 = arith.constant 0 : index
    %31 = vector.load %arg1[%c0_9, %c0_10] : memref<384x128xbf16, #tpu.memory_space<vmem>>, vector<384x128xbf16>
    %cst_11 = arith.constant dense<0.000000e+00> : vector<32x128xf32>
    %32 = tpu.matmul %30, %31, %cst_11 {dimension_numbers = #tpu.dot_dimension_numbers<[1], [0], [0], [1], [0, 0, 1, 1], [], []>} : vector<32x384xbf16>, vector<384x128xbf16>, vector<32x128xf32> -> vector<32x128xf32>
    %c0_12 = arith.constant 0 : index
    %c0_13 = arith.constant 0 : index
    %33 = vector.load %arg2[%c0_12, %c0_13] : memref<1x128xf32, #tpu.memory_space<vmem>>, vector<1x128xf32>
    %c0_14 = arith.constant 0 : index
    %c0_15 = arith.constant 0 : index
    %34 = vector.load %arg3[%c0_14, %c0_15] : memref<1x128xf32, #tpu.memory_space<vmem>>, vector<1x128xf32>
    %cst_16 = arith.constant dense<0.000000e+00> : vector<128xf32>
    %35 = vector.multi_reduction <add>, %32, %cst_16 [0] : vector<32x128xf32> to vector<128xf32>
    %36 = vector.shape_cast %35 : vector<128xf32> to vector<1x128xf32>
    %37 = arith.mulf %32, %32 : vector<32x128xf32>
    %cst_17 = arith.constant dense<0.000000e+00> : vector<128xf32>
    %38 = vector.multi_reduction <add>, %37, %cst_17 [0] : vector<32x128xf32> to vector<128xf32>
    %39 = vector.shape_cast %38 : vector<128xf32> to vector<1x128xf32>
    %40 = tpu.concatenate %36, %39 in 0 : vector<1x128xf32>, vector<1x128xf32> -> vector<2x128xf32>
    %cst_18 = arith.constant dense<0.000000e+00> : vector<2x128xf32>
    %41 = tpu.matmul %40, %0, %cst_18 {dimension_numbers = #tpu.dot_dimension_numbers<[1], [0], [0], [1], [0, 0, 1, 1], [], []>} : vector<2x128xf32>, vector<128x128xf32>, vector<2x128xf32> -> vector<2x128xf32>
    %cst_19 = arith.constant 0.001953125 : f32
    %42 = vector.broadcast %cst_19 : f32 to vector<2x128xf32>
    %43 = arith.mulf %41, %42 : vector<2x128xf32>
    %44 = vector.extract_strided_slice %43 {offsets = [0, 0], sizes = [1, 128], strides = [1, 1]} : vector<2x128xf32> to vector<1x128xf32>
    %45 = vector.extract_strided_slice %43 {offsets = [1, 0], sizes = [1, 128], strides = [1, 1]} : vector<2x128xf32> to vector<1x128xf32>
    %46 = arith.mulf %44, %44 : vector<1x128xf32>
    %47 = arith.subf %45, %46 : vector<1x128xf32>
    %cst_20 = arith.constant 9.99999974E-6 : f32
    %48 = vector.broadcast %cst_20 : f32 to vector<1x128xf32>
    %49 = arith.addf %47, %48 : vector<1x128xf32>
    %50 = math.rsqrt %49 : vector<1x128xf32>
    %51 = arith.mulf %33, %50 : vector<1x128xf32>
    %52 = arith.mulf %44, %51 : vector<1x128xf32>
    %53 = arith.subf %34, %52 : vector<1x128xf32>
    %54 = vector.broadcast %51 : vector<1x128xf32> to vector<32x128xf32>
    %55 = arith.mulf %32, %54 : vector<32x128xf32>
    %56 = vector.broadcast %53 : vector<1x128xf32> to vector<32x128xf32>
    %57 = arith.addf %55, %56 : vector<32x128xf32>
    %cst_21 = arith.constant 0.000000e+00 : f32
    %58 = vector.broadcast %cst_21 : f32 to vector<32x128xf32>
    %59 = arith.maximumf %57, %58 : vector<32x128xf32>
    %c1_i32_22 = arith.constant 1 : i32
    %60 = tpu.dynamic_rotate %59 by %c1_i32_22 dim 0 : vector<32x128xf32>, i32 -> vector<32x128xf32>
    %cst_23 = arith.constant 0.000000e+00 : f32
    %61 = vector.broadcast %cst_23 : f32 to vector<32x128xf32>
    %62 = arith.select %19, %60, %61 : vector<32x128xi1>, vector<32x128xf32>
    %c31_i32_24 = arith.constant 31 : i32
    %63 = tpu.dynamic_rotate %59 by %c31_i32_24 dim 0 : vector<32x128xf32>, i32 -> vector<32x128xf32>
    %cst_25 = arith.constant 0.000000e+00 : f32
    %64 = vector.broadcast %cst_25 : f32 to vector<32x128xf32>
    %65 = arith.select %21, %63, %64 : vector<32x128xi1>, vector<32x128xf32>
    %66 = tpu.concatenate %62, %59, %65 in 1 : vector<32x128xf32>, vector<32x128xf32>, vector<32x128xf32> -> vector<32x384xf32>
    %67 = arith.truncf %66 : vector<32x384xf32> to vector<32x384xbf16>
    %c0_26 = arith.constant 0 : index
    %c0_27 = arith.constant 0 : index
    %68 = vector.load %arg4[%c0_26, %c0_27] : memref<384x128xbf16, #tpu.memory_space<vmem>>, vector<384x128xbf16>
    %cst_28 = arith.constant dense<0.000000e+00> : vector<32x128xf32>
    %69 = tpu.matmul %67, %68, %cst_28 {dimension_numbers = #tpu.dot_dimension_numbers<[1], [0], [0], [1], [0, 0, 1, 1], [], []>} : vector<32x384xbf16>, vector<384x128xbf16>, vector<32x128xf32> -> vector<32x128xf32>
    %c0_29 = arith.constant 0 : index
    %c0_30 = arith.constant 0 : index
    %70 = vector.load %arg5[%c0_29, %c0_30] : memref<1x128xf32, #tpu.memory_space<vmem>>, vector<1x128xf32>
    %c0_31 = arith.constant 0 : index
    %c0_32 = arith.constant 0 : index
    %71 = vector.load %arg6[%c0_31, %c0_32] : memref<1x128xf32, #tpu.memory_space<vmem>>, vector<1x128xf32>
    %cst_33 = arith.constant dense<0.000000e+00> : vector<128xf32>
    %72 = vector.multi_reduction <add>, %69, %cst_33 [0] : vector<32x128xf32> to vector<128xf32>
    %73 = vector.shape_cast %72 : vector<128xf32> to vector<1x128xf32>
    %74 = arith.mulf %69, %69 : vector<32x128xf32>
    %cst_34 = arith.constant dense<0.000000e+00> : vector<128xf32>
    %75 = vector.multi_reduction <add>, %74, %cst_34 [0] : vector<32x128xf32> to vector<128xf32>
    %76 = vector.shape_cast %75 : vector<128xf32> to vector<1x128xf32>
    %77 = tpu.concatenate %73, %76 in 0 : vector<1x128xf32>, vector<1x128xf32> -> vector<2x128xf32>
    %cst_35 = arith.constant dense<0.000000e+00> : vector<2x128xf32>
    %78 = tpu.matmul %77, %0, %cst_35 {dimension_numbers = #tpu.dot_dimension_numbers<[1], [0], [0], [1], [0, 0, 1, 1], [], []>} : vector<2x128xf32>, vector<128x128xf32>, vector<2x128xf32> -> vector<2x128xf32>
    %cst_36 = arith.constant 0.001953125 : f32
    %79 = vector.broadcast %cst_36 : f32 to vector<2x128xf32>
    %80 = arith.mulf %78, %79 : vector<2x128xf32>
    %81 = vector.extract_strided_slice %80 {offsets = [0, 0], sizes = [1, 128], strides = [1, 1]} : vector<2x128xf32> to vector<1x128xf32>
    %82 = vector.extract_strided_slice %80 {offsets = [1, 0], sizes = [1, 128], strides = [1, 1]} : vector<2x128xf32> to vector<1x128xf32>
    %83 = arith.mulf %81, %81 : vector<1x128xf32>
    %84 = arith.subf %82, %83 : vector<1x128xf32>
    %cst_37 = arith.constant 9.99999974E-6 : f32
    %85 = vector.broadcast %cst_37 : f32 to vector<1x128xf32>
    %86 = arith.addf %84, %85 : vector<1x128xf32>
    %87 = math.rsqrt %86 : vector<1x128xf32>
    %88 = arith.mulf %70, %87 : vector<1x128xf32>
    %89 = arith.mulf %81, %88 : vector<1x128xf32>
    %90 = arith.subf %71, %89 : vector<1x128xf32>
    %91 = vector.broadcast %88 : vector<1x128xf32> to vector<32x128xf32>
    %92 = arith.mulf %69, %91 : vector<32x128xf32>
    %93 = vector.broadcast %90 : vector<1x128xf32> to vector<32x128xf32>
    %94 = arith.addf %92, %93 : vector<32x128xf32>
    %95 = arith.addf %94, %22 : vector<32x128xf32>
    %cst_38 = arith.constant 0.000000e+00 : f32
    %96 = vector.broadcast %cst_38 : f32 to vector<32x128xf32>
    %97 = arith.maximumf %95, %96 : vector<32x128xf32>
    %c0_39 = arith.constant 0 : index
    %c0_40 = arith.constant 0 : index
    %98 = vector.load %arg8[%c0_39, %c0_40] : memref<32x128xf32, #tpu.memory_space<vmem>>, vector<32x128xf32>
    tpu.vector_store %arg8[%c0_39, %c0_40], %97 {strides = array<i32>} : memref<32x128xf32, #tpu.memory_space<vmem>>, vector<32x128xf32>,
    return
  }
}

</mosaic_0001>

<bundles_post_ra>
// kernel: tile.23
= control target key start
LH: loop header
LB: loop body
LE: loop exit
PB: predicated region body
PF: predicated region fallthrough
CT: control target
= control target key end

     0   :  { %s28_s0 = inlined_call_operand.vmem [shape: f32[8], index: 0, kind: input, shape index: {}]   ;;  %s29_s1 = inlined_call_operand.vmem [shape: f32[16,8], index: 1, kind: output, shape index: {}]  }
   0x1   :  { %v4_v0 = vld [vmem:[%s28_s0] ss:$0 sm:$0xff] }
   0x2   :  { %5 = vst [vmem:[%s29_s1] sm:$0xff] %v4_v0 }
   0x3   :  { %8 = vst [vmem:[%s29_s1 + $0x8] sm:$0xff] %v4_v0 }

// kernel: tile.24
= control target key start
LH: loop header
LB: loop body
LE: loop exit
PB: predicated region body
PF: predicated region fallthrough
CT: control target
= control target key end

     0   :  { %s131_s10 = smov 120   ;;  %s132_s11 = smov 104   ;;  %vm3_vm0 = vcmask 64512   ;;  %vm9_vm1 = vcmask 1048512   ;;  %vm15_vm2 = vcmask 982912   ;;  %vm21_vm3 = vcmask 917312   ;;  %s207_s0 = inlined_call_operand.vmem [shape: f32[16,8], index: 0, kind: input, shape index: {}]   ;;  %s208_s1 = inlined_call_operand.vmem [shape: f32[1,128], index: 1, kind: output, shape index: {}]  }
   0x1   :  { %v101_v0 = vld [vmem:[%s207_s0 + $0xf] sm:$0x1]   ;;  %v103_v1 = vld [vmem:[%s207_s0 + $0xd] sm:$0x1]   ;;  %v105_v2 = vld [vmem:[%s207_s0 + $0xb] sm:$0x1]  }
   0x2   :  { %7 = vrot.lane.b32.xlu0 %v101_v0, %s131_s10  ;;  %19 = vrot.lane.b32.xlu1 %v103_v1, %s132_s11  ;;  %s133_s14 = smov 88   ;;  %v102_v3 = vld [vmem:[%s207_s0 + $0xe] sm:$0x1]   ;;  %v104_v4 = vld [vmem:[%s207_s0 + $0xc] sm:$0x1]   ;;  %s134_s19 = smov 112  }
   0x3   :  { %31 = vrot.lane.b32.xlu2 %v105_v2, %s133_s14  ;;  %s135_s20 = smov 96   ;;  %v106_v5 = vld [vmem:[%s207_s0 + $0xa] sm:$0x1]   ;;  %s136_s23 = smov 80   ;;  %v107_v6 = vld [vmem:[%s207_s0 + $0x9] sm:$0x1]  }
   0x4   :  { %v108_v7 = vld [vmem:[%s207_s0 + $0x8] sm:$0x1]   ;;  %s137_s28 = smov 72   ;;  %s138_s29 = smov 64   ;;  %v109_v8 = vld [vmem:[%s207_s0 + $0x7] sm:$0x1]  }
   0x5   :  { %s139_s3 = smov 56   ;;  %v110_v9 = vld [vmem:[%s207_s0 + $0x6] sm:$0x1]   ;;  %v111_v10 = vld [vmem:[%s207_s0 + $0x5] sm:$0x1]   ;;  %s140_s8 = smov 48  }
   0x6   :  { %s141_s9 = smov 40   ;;  %v112_v11 = vld [vmem:[%s207_s0 + $0x4] sm:$0x1]   ;;  %s142_s12 = smov 32   ;;  %v113_v12 = vld [vmem:[%s207_s0 + $0x3] sm:$0x1]  }
   0x7   :  { %v114_v13 = vld [vmem:[%s207_s0 + $0x2] sm:$0x1]   ;;  %s143_s17 = smov 24   ;;  %s144_s18 = smov 16   ;;  %v115_v14 = vld [vmem:[%s207_s0 + $0x1] sm:$0x1]  }
   0x8   :  { %s145_s21 = smov 8   ;;  %v2_v15 = vld [vmem:[%s207_s0] sm:$0x1]   ;;  %vm27_vm4 = vcmask 851712   ;;  %vm33_vm5 = vcmask 786112   ;;  %vm39_vm6 = vcmask 720512  }
   0x9   :  { %4 = vst.msk [vmem:[#allocation0] sm:$0x1] %vm3_vm0, %v2_v15   ;;  %vm45_vm7 = vcmask 654912   ;;  %vm51_vm8 = vcmask 589312   ;;  %vm57_vm9 = vcmask 523712   ;;  %vm63_vm10 = vcmask 458112  }
   0xa   :  { %13 = vrot.lane.b32.xlu0 %v102_v3, %s134_s19  ;;  %25 = vrot.lane.b32.xlu1 %v104_v4, %s135_s20  ;;  %vm69_vm11 = vcmask 392512   ;;  %vm75_vm12 = vcmask 326912   ;;  %vm81_vm13 = vcmask 261312   ;;  %vm87_vm14 = vcmask 195712  }
   0xb   :  { %37 = vrot.lane.b32.xlu2 %v106_v5, %s136_s23  ;;  %vm93_vm15 = vcmask 130112  }
  0x12   :  { %43 = vrot.lane.b32.xlu0 %v107_v6, %s137_s28  ;;  %49 = vrot.lane.b32.xlu1 %v108_v7, %s138_s29 }
  0x13   :  { %55 = vrot.lane.b32.xlu2 %v109_v8, %s139_s3 }
  0x1a   :  { %61 = vrot.lane.b32.xlu0 %v110_v9, %s140_s8  ;;  %67 = vrot.lane.b32.xlu1 %v111_v10, %s141_s9 }
  0x1b   :  { %73 = vrot.lane.b32.xlu2 %v112_v11, %s142_s12 }
  0x22   :  { %79 = vrot.lane.b32.xlu0 %v113_v12, %s143_s17  ;;  %85 = vrot.lane.b32.xlu1 %v114_v13, %s144_s18 }
  0x23   :  { %91 = vrot.lane.b32.xlu2 %v115_v14, %s145_s21 }
  0x5d   :  { %v32_v16 = vpop.permute.xlu2 %31  }
  0x65   :  { %v38_v17 = vpop.permute.xlu2 %37  }
  0x6d   :  { %v56_v18 = vpop.permute.xlu2 %55  }
  0x74   :  { %v8_v19 = vpop.permute.xlu0 %7   ;;  %v20_v20 = vpop.permute.xlu1 %19  }
  0x75   :  { %10 = vst.msk [vmem:[#allocation0] sm:$0x1] %vm9_vm1, %v8_v19   ;;  %v74_v21 = vpop.permute.xlu2 %73  }
  0x7c   :  { %v14_v22 = vpop.permute.xlu0 %13   ;;  %v26_v23 = vpop.permute.xlu1 %25  }
  0x7d   :  { %16 = vst.msk [vmem:[#allocation0] sm:$0x1] %vm15_vm2, %v14_v22   ;;  %v92_v24 = vpop.permute.xlu2 %91  }
  0x7e   :  { %22 = vst.msk [vmem:[#allocation0] sm:$0x1] %vm21_vm3, %v20_v20  }
  0x7f   :  { %28 = vst.msk [vmem:[#allocation0] sm:$0x1] %vm27_vm4, %v26_v23  }
  0x80   :  { %34 = vst.msk [vmem:[#allocation0] sm:$0x1] %vm33_vm5, %v32_v16  }
  0x81   :  { %40 = vst.msk [vmem:[#allocation0] sm:$0x1] %vm39_vm6, %v38_v17  }
  0x84   :  { %v44_v25 = vpop.permute.xlu0 %43   ;;  %v50_v26 = vpop.permute.xlu1 %49  }
  0x85   :  { %46 = vst.msk [vmem:[#allocation0] sm:$0x1] %vm45_vm7, %v44_v25  }
  0x86   :  { %52 = vst.msk [vmem:[#allocation0] sm:$0x1] %vm51_vm8, %v50_v26  }
  0x87   :  { %58 = vst.msk [vmem:[#allocation0] sm:$0x1] %vm57_vm9, %v56_v18  }
  0x8c   :  { %v62_v27 = vpop.permute.xlu0 %61   ;;  %v68_v28 = vpop.permute.xlu1 %67  }
  0x8d   :  { %64 = vst.msk [vmem:[#allocation0] sm:$0x1] %vm63_vm10, %v62_v27  }
  0x8e   :  { %70 = vst.msk [vmem:[#allocation0] sm:$0x1] %vm69_vm11, %v68_v28  }
  0x8f   :  { %76 = vst.msk [vmem:[#allocation0] sm:$0x1] %vm75_vm12, %v74_v21  }
  0x94   :  { %v80_v29 = vpop.permute.xlu0 %79   ;;  %v86_v30 = vpop.permute.xlu1 %85  }
  0x95   :  { %82 = vst.msk [vmem:[#allocation0] sm:$0x1] %vm81_vm13, %v80_v29  }
  0x96   :  { %88 = vst.msk [vmem:[#allocation0] sm:$0x1] %vm87_vm14, %v86_v30  }
  0x97   :  { %94 = vst.msk [vmem:[#allocation0] sm:$0x1] %vm93_vm15, %v92_v24  }
  0x9e   :  { %v97_v31 = vld [vmem:[#allocation0] sm:$0x1] }
  0x9f   :  { %100 = vst [vmem:[%s208_s1] sm:$0x1] %v97_v31 }

// kernel: basic_block_forward.1
= control target key start
LH: loop header
LB: loop body
LE: loop exit
PB: predicated region body
PF: predicated region fallthrough
CT: control target
= control target key end

     0   :  { %v45_v12 = vlaneseq  ;;  %vm1128_vm4 = vmmov 1   ;;  %vm415_vm11 = vcmask 1040384   ;;  %s1528_s1 = inlined_call_operand.vmem [shape: bf16[384,128], index: 1, kind: input, shape index: {}]   ;;  %s1529_s0 = inlined_call_operand.vmem [shape: f32[32,128], index: 0, kind: input, shape index: {}]   ;;  %s1530_s7 = inlined_call_operand.vmem [shape: f32[128,128], index: 7, kind: input, shape index: {}]   ;;  %s1531_s4 = inlined_call_operand.vmem [shape: bf16[384,128], index: 4, kind: input, shape index: {}]   ;;  %s1532_s2 = inlined_call_operand.vmem [shape: f32[1,128], index: 2, kind: input, shape index: {}]   ;;  %s1533_s3 = inlined_call_operand.vmem [shape: f32[1,128], index: 3, kind: input, shape index: {}]   ;;  %s1534_s5 = inlined_call_operand.vmem [shape: f32[1,128], index: 5, kind: input, shape index: {}]   ;;  %s1535_s6 = inlined_call_operand.vmem [shape: f32[1,128], index: 6, kind: input, shape index: {}]   ;;  %s1536_s8 = inlined_call_operand.vmem [shape: f32[32,128], index: 8, kind: output, shape index: {}]  }
   0x1   :  { %v1082_v0 = vld [vmem:[%s1528_s1 + $0x38] sm:$0xff]  ;;  %v1081_v3 = vld [vmem:[%s1528_s1 + $0x30] sm:$0xff]  ;;  %v1080_v6 = vld [vmem:[%s1528_s1 + $0x28] sm:$0xff] }
   0x2   :  { %v1090_v1 = vld [vmem:[%s1528_s1 + $0x78] sm:$0xff]  ;;  %334 = vmatpush.bf16.msra.mxu0 %v1082_v0  ;;  %v1089_v4 = vld [vmem:[%s1528_s1 + $0x70] sm:$0xff]  ;;  %v1088_v7 = vld [vmem:[%s1528_s1 + $0x68] sm:$0xff]  ;;  %v1219_v16 = vshrl.u32 %v45_v12, 7 }
   0x3   :  { %v1098_v2 = vld [vmem:[%s1528_s1 + $0xb8] sm:$0xff]  ;;  %353 = vmatpush.bf16.msra.mxu1 %v1090_v1  ;;  %v1097_v5 = vld [vmem:[%s1528_s1 + $0xb0] sm:$0xff]  ;;  %v1096_v8 = vld [vmem:[%s1528_s1 + $0xa8] sm:$0xff] }
   0x4   :  { %372 = vmatpush.bf16.msra.mxu2 %v1098_v2  ;;  %v1079_v9 = vld [vmem:[%s1528_s1 + $0x20] sm:$0xff]  ;;  %v1078_v13 = vld [vmem:[%s1528_s1 + $0x18] sm:$0xff]  ;;  %v1077_v17 = vld [vmem:[%s1528_s1 + $0x10] sm:$0xff]  ;;  %v47_v23 = vadd.s32 8, %v1219_v16  ;;  %v54_v27 = vand.u32 15, %v1219_v16  ;;  %vm114_vm0 = vcmp.lt.s32.totalorder %v1219_v16, 1 }
   0x5   :  { %v1087_v10 = vld [vmem:[%s1528_s1 + $0x60] sm:$0xff]  ;;  %v1086_v14 = vld [vmem:[%s1528_s1 + $0x58] sm:$0xff]  ;;  %v1085_v18 = vld [vmem:[%s1528_s1 + $0x50] sm:$0xff]  ;;  %vm127_vm1 = vcmp.lt.s32.totalorder %v1219_v16, 7  ;;  %v48_v48 = vadd.s32 16, %v1219_v16  ;;  %v49_v49 = vadd.s32 24, %v1219_v16 }
   0x6   :  { %335 = vmatpush.bf16.msra.mxu0 %v1081_v3  ;;  %v1095_v11 = vld [vmem:[%s1528_s1 + $0xa0] sm:$0xff]  ;;  %v1094_v15 = vld [vmem:[%s1528_s1 + $0x98] sm:$0xff]  ;;  %v1093_v19 = vld [vmem:[%s1528_s1 + $0x90] sm:$0xff]  ;;  %v61_v35 = vand.u32 15, %v47_v23  ;;  %vm98_vm2 = vcmp.ne.s32.totalorder %v54_v27, 0 }
   0x7   :  { %354 = vmatpush.bf16.msra.mxu1 %v1089_v4  ;;  %v1233_v20 = vld [vmem:[%s1529_s0] sm:$0xff]  ;;  %v1238_v21 = vld [vmem:[%s1529_s0 + $0x8] sm:$0xff]  ;;  %v1243_v22 = vld [vmem:[%s1529_s0 + $0x18] sm:$0xff]  ;;  %v68_v51 = vand.u32 15, %v48_v48  ;;  %v75_v53 = vand.u32 15, %v49_v49 }
   0x8   :  { %373 = vmatpush.bf16.msra.mxu2 %v1097_v5  ;;  %v1249_v24 = vld [vmem:[%s1529_s0 + $0x10] sm:$0xff]  ;;  %v1076_v25 = vld [vmem:[%s1528_s1 + $0x8] sm:$0xff]  ;;  %v110_v28 = vrot.slane %v1233_v20, 7  ;;  %v111_v29 = vrot.slane %v1238_v21, 7  ;;  %v113_v30 = vrot.slane %v1243_v22, 7  ;;  %v123_v32 = vrot.slane %v1233_v20, 1  ;;  %vm1289_vm5 = vmpackc.low %vm1128_vm4, %vm98_vm2 }
   0x9   :  { %v1084_v26 = vld [vmem:[%s1528_s1 + $0x48] sm:$0xff]  ;;  %v124_v33 = vrot.slane %v1238_v21, 1  ;;  %v125_v34 = vrot.slane %v1249_v24, 1  ;;  %v1075_v36 = vld [vmem:[%s1528_s1] sm:$0xff]  ;;  %vm103_vm3 = vcmp.ne.s32.totalorder %v61_v35, 15  ;;  %v137_v44 = vpack.c.bf16 %v1238_v21, %v1233_v20  ;;  %v44_v63 = vld [vmem:[%s1530_s7 + $0x78] sm:$0xff] }
   0xa   :  { %336 = vmatpush.bf16.msra.mxu0 %v1080_v6  ;;  %v1092_v31 = vld [vmem:[%s1528_s1 + $0x88] sm:$0xff]  ;;  %v1083_v37 = vld [vmem:[%s1528_s1 + $0x40] sm:$0xff]  ;;  %v117_v38 = vsel %vm114_vm0, %v110_v28, %v111_v29  ;;  %v118_v39 = vsel %vm114_vm0, %v113_v30, %v110_v28  ;;  %vm1294_vm6 = vmpackc.low %vm103_vm3, %vm1128_vm4  ;;  %v112_v50 = vrot.slane %v1249_v24, 7  ;;  %v126_v52 = vrot.slane %v1243_v22, 1  ;;  %417 = vmatpush.msra.mxu3 %v44_v63 }
   0xb   :  { %355 = vmatpush.bf16.msra.mxu1 %v1088_v7  ;;  %v1091_v40 = vld [vmem:[%s1528_s1 + $0x80] sm:$0xff]  ;;  %v129_v41 = vsel %vm127_vm1, %v124_v33, %v125_v34  ;;  %v130_v42 = vsel %vm127_vm1, %v123_v32, %v124_v33  ;;  %v956_v43 = vpack.c.bf16 %v117_v38, %v118_v39  ;;  %vm100_vm7 = vcmp.ne.s32.totalorder %v68_v51, 0  ;;  %v43_v0 = vld [vmem:[%s1530_s7 + $0x70] sm:$0xff]  ;;  %v42_v1 = vld [vmem:[%s1530_s7 + $0x68] sm:$0xff] }
   0xc   :  { %374 = vmatpush.bf16.msra.mxu2 %v1096_v8  ;;  %v962_v46 = vpack.c.bf16 %v129_v41, %v130_v42  ;;  %v115_v54 = vsel %vm114_vm0, %v112_v50, %v113_v30  ;;  %v116_v55 = vsel %vm114_vm0, %v111_v29, %v112_v50  ;;  %v128_v56 = vsel %vm127_vm1, %v125_v34, %v126_v52  ;;  %vm1317_vm9 = vmpackc.low %vm1128_vm4, %vm100_vm7  ;;  %v41_v2 = vld [vmem:[%s1530_s7 + $0x60] sm:$0xff]  ;;  %v40_v3 = vld [vmem:[%s1530_s7 + $0x58] sm:$0xff] }
   0xd   :  { %v131_v57 = vsel %vm127_vm1, %v126_v52, %v123_v32  ;;  %vm105_vm8 = vcmp.ne.s32.totalorder %v75_v53, 15  ;;  %v959_v58 = vpack.c.bf16 %v115_v54, %v116_v55  ;;  %v140_v59 = vpack.c.bf16 %v1243_v22, %v1249_v24  ;;  %418 = vmatpush.msra.mxu3 %v43_v0  ;;  %v39_v4 = vld [vmem:[%s1530_s7 + $0x50] sm:$0xff]  ;;  %v38_v5 = vld [vmem:[%s1530_s7 + $0x48] sm:$0xff]  ;;  %v37_v8 = vld [vmem:[%s1530_s7 + $0x40] sm:$0xff] }
   0xe   :  { %337 = vmatpush.bf16.msra.mxu0 %v1079_v9  ;;  %v965_v61 = vpack.c.bf16 %v131_v57, %v128_v56  ;;  %vm1322_vm10 = vmpackc.low %vm105_vm8, %vm1128_vm4  ;;  %v36_v9 = vld [vmem:[%s1530_s7 + $0x38] sm:$0xff] }
   0xf   :  { %356 = vmatpush.bf16.msra.mxu1 %v1087_v10  ;;  %419 = vmatpush.msra.mxu3 %v42_v1  ;;  %v35_v10 = vld [vmem:[%s1530_s7 + $0x30] sm:$0xff] }
  0x10   :  { %375 = vmatpush.bf16.msra.mxu2 %v1095_v11  ;;  %v34_v11 = vld [vmem:[%s1530_s7 + $0x28] sm:$0xff] }
  0x11   :  { %420 = vmatpush.msra.mxu3 %v41_v2 }
  0x12   :  { %338 = vmatpush.bf16.msra.mxu0 %v1078_v13  ;;  %v33_v13 = vld [vmem:[%s1530_s7 + $0x20] sm:$0xff] }
  0x13   :  { %357 = vmatpush.bf16.msra.mxu1 %v1086_v14  ;;  %421 = vmatpush.msra.mxu3 %v40_v3 }
  0x14   :  { %376 = vmatpush.bf16.msra.mxu2 %v1094_v15 }
  0x15   :  { %422 = vmatpush.msra.mxu3 %v39_v4 }
  0x16   :  { %339 = vmatpush.bf16.msra.mxu0 %v1077_v17  ;;  %v32_v17 = vld [vmem:[%s1530_s7 + $0x18] sm:$0xff] }
  0x17   :  { %358 = vmatpush.bf16.msra.mxu1 %v1085_v18  ;;  %423 = vmatpush.msra.mxu3 %v38_v5  ;;  %v31_v18 = vld [vmem:[%s1530_s7 + $0x10] sm:$0xff] }
  0x18   :  { %377 = vmatpush.bf16.msra.mxu2 %v1093_v19  ;;  %v30_v19 = vld [vmem:[%s1530_s7 + $0x8] sm:$0xff] }
  0x19   :  { %424 = vmatpush.msra.mxu3 %v37_v8 }
  0x1a   :  { %340 = vmatpush.bf16.msra.mxu0 %v1076_v25  ;;  %v29_v25 = vld [vmem:[%s1530_s7] sm:$0xff] }
  0x1b   :  { %359 = vmatpush.bf16.msra.mxu1 %v1084_v26  ;;  %425 = vmatpush.msra.mxu3 %v36_v9 }
  0x1c   :  { %378 = vmatpush.bf16.msra.mxu2 %v1092_v31 }
  0x1d   :  { %426 = vmatpush.msra.mxu3 %v35_v10 }
  0x1e   :  { %341 = vmatpush.bf16.msra.mxu0 %v1075_v36 }
  0x1f   :  { %360 = vmatpush.bf16.msra.mxu1 %v1083_v37  ;;  %427 = vmatpush.msra.mxu3 %v34_v11 }
  0x20   :  { %379 = vmatpush.bf16.msra.mxu2 %v1091_v40 }
  0x21   :  { %957 = vmatmul.msk.bf16.vlgmr.msra.gmra.mxu0 %vm1289_vm5, %v956_v43  ;;  %428 = vmatpush.msra.mxu3 %v33_v13 }
  0x22   :  { %361 = vmatmul.bf16.vlgmr.msra.gmra.mxu1 %v137_v44 }
  0x23   :  { %963 = vmatmul.msk.bf16.vlgmr.msra.gmra.mxu2 %vm1294_vm6, %v962_v46  ;;  %429 = vmatpush.msra.mxu3 %v32_v17 }
  0x25   :  { %430 = vmatpush.msra.mxu3 %v31_v18 }
  0x27   :  { %431 = vmatpush.msra.mxu3 %v30_v19 }
  0x29   :  { %432 = vmatpush.msra.mxu3 %v29_v25 }
  0x2b   :  { %784 = vmatpush.msrb.mxu3 %v44_v63 }
  0x2d   :  { %785 = vmatpush.msrb.mxu3 %v43_v0 }
  0x2f   :  { %786 = vmatpush.msrb.mxu3 %v42_v1 }
  0x31   :  { %960 = vmatmul.msk.bf16.gmra.mxu0 %vm1317_vm9, %v959_v58  ;;  %787 = vmatpush.msrb.mxu3 %v41_v2 }
  0x32   :  { %366 = vmatmul.bf16.gmra.mxu1 %v140_v59 }
  0x33   :  { %966 = vmatmul.msk.bf16.gmra.mxu2 %vm1322_vm10, %v965_v61  ;;  %788 = vmatpush.msrb.mxu3 %v40_v3  ;;  %v1114_v3 = vld [vmem:[%s1531_s4 + $0x78] sm:$0xff] }
  0x34   :  { %721 = vmatpush.bf16.msrb.mxu1 %v1114_v3 }
  0x35   :  { %789 = vmatpush.msrb.mxu3 %v39_v4  ;;  %v1122_v4 = vld [vmem:[%s1531_s4 + $0xb8] sm:$0xff] }
  0x36   :  { %740 = vmatpush.bf16.msrb.mxu2 %v1122_v4 }
  0x37   :  { %790 = vmatpush.msrb.mxu3 %v38_v5  ;;  %v1106_v5 = vld [vmem:[%s1531_s4 + $0x38] sm:$0xff] }
  0x38   :  { %702 = vmatpush.bf16.msrb.mxu0 %v1106_v5 }
  0x39   :  { %791 = vmatpush.msrb.mxu3 %v37_v8  ;;  %v1105_v8 = vld [vmem:[%s1531_s4 + $0x30] sm:$0xff] }
  0x3b   :  { %792 = vmatpush.msrb.mxu3 %v36_v9  ;;  %v1112_v9 = vld [vmem:[%s1531_s4 + $0x68] sm:$0xff] }
  0x3c   :  { %703 = vmatpush.bf16.msrb.mxu0 %v1105_v8 }
  0x3d   :  { %793 = vmatpush.msrb.mxu3 %v35_v10  ;;  %v1120_v10 = vld [vmem:[%s1531_s4 + $0xa8] sm:$0xff] }
  0x3f   :  { %794 = vmatpush.msrb.mxu3 %v34_v11  ;;  %v1104_v11 = vld [vmem:[%s1531_s4 + $0x28] sm:$0xff] }
  0x40   :  { %704 = vmatpush.bf16.msrb.mxu0 %v1104_v11 }
  0x41   :  { %795 = vmatpush.msrb.mxu3 %v33_v13 }
  0x43   :  { %796 = vmatpush.msrb.mxu3 %v32_v17  ;;  %v1103_v17 = vld [vmem:[%s1531_s4 + $0x20] sm:$0xff] }
  0x44   :  { %705 = vmatpush.bf16.msrb.mxu0 %v1103_v17 }
  0x45   :  { %797 = vmatpush.msrb.mxu3 %v31_v18  ;;  %v1110_v18 = vld [vmem:[%s1531_s4 + $0x58] sm:$0xff] }
  0x47   :  { %798 = vmatpush.msrb.mxu3 %v30_v19 }
  0x49   :  { %799 = vmatpush.msrb.mxu3 %v29_v25  ;;  %v1118_v25 = vld [vmem:[%s1531_s4 + $0x98] sm:$0xff] }
  0x9e   :  { %v343_v6 = vpop.f32.mrf.mxu0 }
  0x9f   :  { %v362_v7 = vpop.f32.mrf.mxu1 }
  0xa0   :  { %v363_v28 = vadd.f32 %v362_v7, %v343_v6  ;;  %v1113_v6 = vld [vmem:[%s1531_s4 + $0x70] sm:$0xff] }
  0xa1   :  { %722 = vmatpush.bf16.msrb.mxu1 %v1113_v6  ;;  %v1121_v7 = vld [vmem:[%s1531_s4 + $0xb0] sm:$0xff] }
  0xa2   :  { %741 = vmatpush.bf16.msrb.mxu2 %v1121_v7 }
  0xa5   :  { %723 = vmatpush.bf16.msrb.mxu1 %v1112_v9 }
  0xa6   :  { %v381_v12 = vpop.f32.mrf.mxu2  ;;  %v345_v14 = vpop.f32.mrf.mxu0  ;;  %742 = vmatpush.bf16.msrb.mxu2 %v1120_v10 }
  0xa7   :  { %v364_v15 = vpop.f32.mrf.mxu1  ;;  %v1380_v33 = vadd.f32 %v381_v12, %v363_v28  ;;  %v1111_v12 = vld [vmem:[%s1531_s4 + $0x60] sm:$0xff] }
  0xa8   :  { %v365_v29 = vadd.f32 %v364_v15, %v345_v14  ;;  %v1119_v15 = vld [vmem:[%s1531_s4 + $0xa0] sm:$0xff] }
  0xa9   :  { %v402_v38 = vmul.f32 %v1380_v33, %v1380_v33  ;;  %724 = vmatpush.bf16.msrb.mxu1 %v1111_v12 }
  0xaa   :  { %743 = vmatpush.bf16.msrb.mxu2 %v1119_v15 }
  0xad   :  { %725 = vmatpush.bf16.msrb.mxu1 %v1110_v18 }
  0xae   :  { %v383_v23 = vpop.f32.mrf.mxu2  ;;  %v348_v26 = vpop.f32.mrf.mxu0  ;;  %744 = vmatpush.bf16.msrb.mxu2 %v1118_v25 }
  0xaf   :  { %v367_v27 = vpop.f32.mrf.mxu1  ;;  %v1378_v32 = vadd.f32 %v383_v23, %v365_v29 }
  0xb0   :  { %v368_v30 = vadd.f32 %v367_v27, %v348_v26  ;;  %v1102_v26 = vld [vmem:[%s1531_s4 + $0x18] sm:$0xff]  ;;  %v1109_v27 = vld [vmem:[%s1531_s4 + $0x50] sm:$0xff] }
  0xb1   :  { %v403_v37 = vmul.f32 %v1378_v32, %v1378_v32  ;;  %v393_v39 = vadd.f32 %v1378_v32, %v1380_v33  ;;  %706 = vmatpush.bf16.msrb.mxu0 %v1102_v26  ;;  %726 = vmatpush.bf16.msrb.mxu1 %v1109_v27 }
  0xb3   :  { %v406_v43 = vadd.f32 %v403_v37, %v402_v38  ;;  %v1100_v37 = vld [vmem:[%s1531_s4 + $0x8] sm:$0xff]  ;;  %v1107_v38 = vld [vmem:[%s1531_s4 + $0x40] sm:$0xff] }
  0xb6   :  { %v386_v31 = vpop.f32.mrf.mxu2  ;;  %v350_v35 = vpop.f32.mrf.mxu0 }
  0xb7   :  { %v1382_v34 = vadd.f32 %v386_v31, %v368_v30  ;;  %v369_v36 = vpop.f32.mrf.mxu1  ;;  %v1117_v30 = vld [vmem:[%s1531_s4 + $0x90] sm:$0xff] }
  0xb8   :  { %v370_v41 = vadd.f32 %v369_v36, %v350_v35  ;;  %v1101_v31 = vld [vmem:[%s1531_s4 + $0x10] sm:$0xff]  ;;  %v1108_v35 = vld [vmem:[%s1531_s4 + $0x48] sm:$0xff]  ;;  %745 = vmatpush.bf16.msrb.mxu2 %v1117_v30 }
  0xb9   :  { %v404_v40 = vmul.f32 %v1382_v34, %v1382_v34  ;;  %v394_v44 = vadd.f32 %v393_v39, %v1382_v34  ;;  %707 = vmatpush.bf16.msrb.mxu0 %v1101_v31  ;;  %727 = vmatpush.bf16.msrb.mxu1 %v1108_v35  ;;  %v1116_v36 = vld [vmem:[%s1531_s4 + $0x88] sm:$0xff]  ;;  %v1115_v39 = vld [vmem:[%s1531_s4 + $0x80] sm:$0xff] }
  0xbb   :  { %v407_v48 = vadd.f32 %v406_v43, %v404_v40  ;;  %v1099_v40 = vld [vmem:[%s1531_s4] sm:$0xff] }
  0xbc   :  { %746 = vmatpush.bf16.msrb.mxu2 %v1116_v36 }
  0xbd   :  { %708 = vmatpush.bf16.msrb.mxu0 %v1100_v37  ;;  %728 = vmatpush.bf16.msrb.mxu1 %v1107_v38 }
  0xbe   :  { %v388_v42 = vpop.f32.mrf.mxu2 }
  0xbf   :  { %v1393_v46 = vadd.f32 %v388_v42, %v370_v41 }
  0xc0   :  { %747 = vmatpush.bf16.msrb.mxu2 %v1115_v39 }
  0xc1   :  { %v395_v49 = vadd.f32 %v394_v44, %v1393_v46  ;;  %v405_v50 = vmul.f32 %v1393_v46, %v1393_v46  ;;  %709 = vmatpush.bf16.msrb.mxu0 %v1099_v40 }
  0xc3   :  { %v396_v51 = vrot.slane %v395_v49, 4  ;;  %v408_v52 = vadd.f32 %v407_v48, %v405_v50 }
  0xc5   :  { %v397_v53 = vadd.f32 %v396_v51, %v395_v49  ;;  %v409_v54 = vrot.slane %v408_v52, 4  ;;  %v391_v51 = vld [vmem:[%s1532_s2] sm:$0x1] }
  0xc7   :  { %v398_v55 = vrot.slane %v397_v53, 2  ;;  %v410_v56 = vadd.f32 %v409_v54, %v408_v52  ;;  %v392_v54 = vld [vmem:[%s1533_s3] sm:$0x1] }
  0xc9   :  { %v399_v57 = vadd.f32 %v398_v55, %v397_v53  ;;  %v411_v58 = vrot.slane %v410_v56, 2 }
  0xcb   :  { %v400_v59 = vrot.slane %v399_v57, 1  ;;  %v412_v61 = vadd.f32 %v411_v58, %v410_v56 }
  0xcd   :  { %v413_v63 = vrot.slane %v412_v61, 1  ;;  %v401_v0 = vadd.f32 %v400_v59, %v399_v57 }
  0xcf   :  { %v414_v1 = vadd.f32 %v413_v63, %v412_v61 }
  0xd1   :  { %v416_v2 = vsel %vm415_vm11, %v401_v0, %v414_v1 }
  0xd2   :  { %433 = vmatmul.f32.vlgmr.msra.gmra.mxu3 %v416_v2 }
 0x155   :  { %v434_v13 = vpop.f32.mrf.mxu3 }
 0x156   :  { %v437_v14 = vmul.f32 0.001953125, %v434_v13 }
 0x158   :  { %v438_v19 = vmul.f32 %v437_v14, %v437_v14 }
 0x15a   :  { %v440_v23 = vrot.slane %v438_v19, 7 }
 0x15c   :  { %v442_v28 = vsub.f32 %v437_v14, %v440_v23 }
 0x15e   :  { %v443_v29 = vadd.f32 1e-05, %v442_v28 }
 0x160   :  { %1124 = vrsqrt.f32 %v443_v29  ;;  %vm450_vm13 = vweird.f32 %v443_v29 }
 0x166   :  { %v1125_v41 = vpop.eup %1124 }
 0x167   :  { %v445_v42 = vmul.f32 %v1125_v41, %v443_v29  ;;  %vm451_vm12 = vweird.f32 %v1125_v41 }
 0x168   :  { %vm452_vm14 = vmor %vm450_vm13, %vm451_vm12 }
 0x169   :  { %v446_v43 = vmul.f32 %v1125_v41, %v445_v42 }
 0x16b   :  { %v447_v44 = vmul.f32 0.5, %v446_v43 }
 0x16d   :  { %v448_v48 = vsub.f32 1.5, %v447_v44 }
 0x16f   :  { %v449_v49 = vmul.f32 %v1125_v41, %v448_v48 }
 0x171   :  { %v453_v50 = vsel %vm452_vm14, %v1125_v41, %v449_v49 }
 0x172   :  { %455 = vst [vmem:[#allocation1] sm:$0xff] %v453_v50 }
 0x179   :  { %v457_v52 = vld [vmem:[#allocation1 + $0x1] ss:$9 sm:$0xff] }
 0x17a   :  { %v459_v53 = vmul.f32 %v457_v52, %v391_v51 }
 0x17c   :  { %v460_v55 = vmul.f32 %v459_v53, %v437_v14  ;;  %v463_v56 = vperm.slane %v459_v53, 0 }
 0x17e   :  { %v461_v57 = vsub.f32 %v392_v54, %v460_v55  ;;  %v467_v58 = vmul.f32 %v463_v56, %v1382_v34  ;;  %v468_v59 = vmul.f32 %v463_v56, %v1393_v46  ;;  %v465_v63 = vmul.f32 %v463_v56, %v1380_v33 }
 0x17f   :  { %v466_v0 = vmul.f32 %v463_v56, %v1378_v32 }
 0x180   :  { %v470_v61 = vperm.slane %v461_v57, 0 }
 0x182   :  { %v474_v1 = vadd.f32 %v470_v61, %v467_v58  ;;  %v475_v2 = vadd.f32 %v470_v61, %v468_v59  ;;  %v472_v3 = vadd.f32 %v470_v61, %v465_v63  ;;  %v473_v4 = vadd.f32 %v470_v61, %v466_v0 }
 0x184   :  { %v478_v5 = vmax.f32 %v474_v1, 0.0  ;;  %v479_v6 = vmax.f32 %v475_v2, 0.0  ;;  %v476_v7 = vmax.f32 %v472_v3, 0.0  ;;  %v477_v8 = vmax.f32 %v473_v4, 0.0 }
 0x186   :  { %v505_v9 = vpack.c.bf16 %v477_v8, %v476_v7  ;;  %v480_v10 = vrot.slane %v476_v7, 7  ;;  %v481_v11 = vrot.slane %v477_v8, 7  ;;  %v483_v12 = vrot.slane %v479_v6, 7 }
 0x187   :  { %v492_v34 = vrot.slane %v476_v7, 1  ;;  %v493_v13 = vrot.slane %v477_v8, 1  ;;  %v494_v46 = vrot.slane %v478_v5, 1  ;;  %v482_v19 = vrot.slane %v478_v5, 7 }
 0x188   :  { %729 = vmatmul.bf16.vlgmr.msrb.gmra.mxu1 %v505_v9  ;;  %v486_v33 = vsel %vm114_vm0, %v480_v10, %v481_v11  ;;  %v487_v32 = vsel %vm114_vm0, %v483_v12, %v480_v10  ;;  %v495_v23 = vrot.slane %v479_v6, 1  ;;  %v508_v25 = vpack.c.bf16 %v479_v6, %v478_v5 }
 0x189   :  { %v1064_v14 = vpack.c.bf16 %v486_v33, %v487_v32  ;;  %v497_v15 = vsel %vm127_vm1, %v493_v13, %v494_v46  ;;  %v498_v17 = vsel %vm127_vm1, %v492_v34, %v493_v13  ;;  %v484_v26 = vsel %vm114_vm0, %v482_v19, %v483_v12 }
 0x18a   :  { %v1070_v18 = vpack.c.bf16 %v497_v15, %v498_v17  ;;  %v485_v27 = vsel %vm114_vm0, %v481_v11, %v482_v19  ;;  %v496_v28 = vsel %vm127_vm1, %v494_v46, %v495_v23  ;;  %v499_v29 = vsel %vm127_vm1, %v495_v23, %v492_v34 }
 0x18b   :  { %1065 = vmatmul.msk.bf16.vlgmr.msrb.gmra.mxu0 %vm1289_vm5, %v1064_v14  ;;  %v1067_v45 = vpack.c.bf16 %v484_v26, %v485_v27  ;;  %v1073_v30 = vpack.c.bf16 %v499_v29, %v496_v28  ;;  %v759_v28 = vld [vmem:[%s1534_s5] sm:$0x1] }
 0x18c   :  { %1071 = vmatmul.msk.bf16.vlgmr.msrb.gmra.mxu2 %vm1294_vm6, %v1070_v18 }
 0x198   :  { %734 = vmatmul.bf16.gmra.mxu1 %v508_v25 }
 0x19b   :  { %1068 = vmatmul.msk.bf16.gmra.mxu0 %vm1317_vm9, %v1067_v45 }
 0x19c   :  { %1074 = vmatmul.msk.bf16.gmra.mxu2 %vm1322_vm10, %v1073_v30  ;;  %v760_v30 = vld [vmem:[%s1535_s6] sm:$0x1] }
 0x205   :  { %v730_v47 = vpop.f32.mrf.mxu1 }
 0x208   :  { %v711_v31 = vpop.f32.mrf.mxu0 }
 0x209   :  { %v731_v42 = vadd.f32 %v730_v47, %v711_v31 }
 0x20d   :  { %v732_v37 = vpop.f32.mrf.mxu1 }
 0x20f   :  { %v749_v35 = vpop.f32.mrf.mxu2 }
 0x210   :  { %v713_v36 = vpop.f32.mrf.mxu0  ;;  %v750_v48 = vadd.f32 %v749_v35, %v731_v42 }
 0x211   :  { %v733_v41 = vadd.f32 %v732_v37, %v713_v36 }
 0x212   :  { %v770_v62 = vmul.f32 %v750_v48, %v750_v48 }
 0x215   :  { %v735_v40 = vpop.f32.mrf.mxu1 }
 0x217   :  { %v751_v38 = vpop.f32.mrf.mxu2 }
 0x218   :  { %v716_v39 = vpop.f32.mrf.mxu0  ;;  %v752_v43 = vadd.f32 %v751_v38, %v733_v41 }
 0x219   :  { %v736_v44 = vadd.f32 %v735_v40, %v716_v39 }
 0x21a   :  { %v771_v50 = vmul.f32 %v752_v43, %v752_v43  ;;  %v761_v52 = vadd.f32 %v752_v43, %v750_v48 }
 0x21c   :  { %v774_v56 = vadd.f32 %v771_v50, %v770_v62 }
 0x21d   :  { %v737_v51 = vpop.f32.mrf.mxu1 }
 0x21f   :  { %v754_v16 = vpop.f32.mrf.mxu2 }
 0x220   :  { %v755_v49 = vadd.f32 %v754_v16, %v736_v44  ;;  %v718_v60 = vpop.f32.mrf.mxu0 }
 0x221   :  { %v738_v54 = vadd.f32 %v737_v51, %v718_v60 }
 0x222   :  { %v772_v53 = vmul.f32 %v755_v49, %v755_v49  ;;  %v762_v57 = vadd.f32 %v761_v52, %v755_v49 }
 0x224   :  { %v775_v59 = vadd.f32 %v774_v56, %v772_v53 }
 0x227   :  { %v756_v55 = vpop.f32.mrf.mxu2 }
 0x228   :  { %v757_v58 = vadd.f32 %v756_v55, %v738_v54 }
 0x22a   :  { %v763_v61 = vadd.f32 %v762_v57, %v757_v58  ;;  %v773_v63 = vmul.f32 %v757_v58, %v757_v58 }
 0x22c   :  { %v764_v0 = vrot.slane %v763_v61, 4  ;;  %v776_v1 = vadd.f32 %v775_v59, %v773_v63 }
 0x22e   :  { %v765_v2 = vadd.f32 %v764_v0, %v763_v61  ;;  %v777_v3 = vrot.slane %v776_v1, 4 }
 0x230   :  { %v766_v4 = vrot.slane %v765_v2, 2  ;;  %v778_v5 = vadd.f32 %v777_v3, %v776_v1 }
 0x232   :  { %v767_v6 = vadd.f32 %v766_v4, %v765_v2  ;;  %v779_v7 = vrot.slane %v778_v5, 2 }
 0x234   :  { %v768_v8 = vrot.slane %v767_v6, 1  ;;  %v780_v9 = vadd.f32 %v779_v7, %v778_v5 }
 0x236   :  { %v781_v10 = vrot.slane %v780_v9, 1  ;;  %v769_v11 = vadd.f32 %v768_v8, %v767_v6 }
 0x238   :  { %v782_v12 = vadd.f32 %v781_v10, %v780_v9 }
 0x23a   :  { %v783_v34 = vsel %vm415_vm11, %v769_v11, %v782_v12 }
 0x23b   :  { %800 = vmatmul.f32.vlgmr.msrb.gmra.mxu3 %v783_v34 }
 0x2be   :  { %v801_v13 = vpop.f32.mrf.mxu3 }
 0x2bf   :  { %v804_v46 = vmul.f32 0.001953125, %v801_v13 }
 0x2c1   :  { %v805_v33 = vmul.f32 %v804_v46, %v804_v46 }
 0x2c3   :  { %v807_v32 = vrot.slane %v805_v33, 7 }
 0x2c5   :  { %v809_v14 = vsub.f32 %v804_v46, %v807_v32 }
 0x2c7   :  { %v810_v15 = vadd.f32 1e-05, %v809_v14 }
 0x2c9   :  { %1126 = vrsqrt.f32 %v810_v15  ;;  %vm817_vm0 = vweird.f32 %v810_v15 }
 0x2cf   :  { %v1127_v17 = vpop.eup %1126 }
 0x2d0   :  { %v812_v18 = vmul.f32 %v1127_v17, %v810_v15  ;;  %vm818_vm15 = vweird.f32 %v1127_v17 }
 0x2d1   :  { %vm819_vm1 = vmor %vm817_vm0, %vm818_vm15 }
 0x2d2   :  { %v813_v19 = vmul.f32 %v1127_v17, %v812_v18 }
 0x2d4   :  { %v814_v23 = vmul.f32 0.5, %v813_v19 }
 0x2d6   :  { %v815_v25 = vsub.f32 1.5, %v814_v23 }
 0x2d8   :  { %v816_v26 = vmul.f32 %v1127_v17, %v815_v25 }
 0x2da   :  { %v820_v27 = vsel %vm819_vm1, %v1127_v17, %v816_v26 }
 0x2db   :  { %822 = vst [vmem:[#allocation1] sm:$0xff] %v820_v27 }
 0x2e2   :  { %v824_v29 = vld [vmem:[#allocation1 + $0x1] ss:$9 sm:$0xff] }
 0x2e3   :  { %v826_v45 = vmul.f32 %v824_v29, %v759_v28 }
 0x2e5   :  { %v827_v47 = vmul.f32 %v826_v45, %v804_v46  ;;  %v830_v31 = vperm.slane %v826_v45, 0 }
 0x2e7   :  { %v828_v35 = vsub.f32 %v760_v30, %v827_v47  ;;  %v832_v36 = vmul.f32 %v830_v31, %v750_v48  ;;  %v833_v37 = vmul.f32 %v830_v31, %v752_v43  ;;  %v834_v38 = vmul.f32 %v830_v31, %v755_v49 }
 0x2e8   :  { %v835_v39 = vmul.f32 %v830_v31, %v757_v58 }
 0x2e9   :  { %v837_v40 = vperm.slane %v828_v35, 0 }
 0x2eb   :  { %v839_v41 = vadd.f32 %v837_v40, %v832_v36  ;;  %v840_v16 = vadd.f32 %v837_v40, %v833_v37  ;;  %v841_v42 = vadd.f32 %v837_v40, %v834_v38  ;;  %v842_v44 = vadd.f32 %v837_v40, %v835_v39 }
 0x2ed   :  { %v843_v60 = vadd.f32 %v839_v41, %v1233_v20  ;;  %v844_v50 = vadd.f32 %v840_v16, %v1238_v21  ;;  %v845_v51 = vadd.f32 %v841_v42, %v1249_v24  ;;  %v846_v62 = vadd.f32 %v842_v44, %v1243_v22 }
 0x2ef   :  { %v847_v52 = vmax.f32 %v843_v60, 0.0  ;;  %v848_v53 = vmax.f32 %v844_v50, 0.0  ;;  %v849_v54 = vmax.f32 %v845_v51, 0.0  ;;  %v850_v48 = vmax.f32 %v846_v62, 0.0 }
 0x2f1   :  { %851 = vst [vmem:[%s1536_s8] sm:$0xff] %v847_v52 }
 0x2f2   :  { %852 = vst [vmem:[%s1536_s8 + $0x8] sm:$0xff] %v848_v53 }
 0x2f3   :  { %853 = vst [vmem:[%s1536_s8 + $0x10] sm:$0xff] %v849_v54 }
 0x2f4   :  { %854 = vst [vmem:[%s1536_s8 + $0x18] sm:$0xff] %v850_v48 }

</bundles_post_ra>
